<compile_context>
chip_gen: v6e
topology: v6e:2x2x1
jax: 0.10.0
libtpu: 0.0.40
codegen_flags: <defaults>
</compile_context>

<pallas_src>
import functools
import math

import jax
import jax.numpy as jnp
from jax import lax
from jax.experimental import pallas as pl
from jax.experimental.pallas import tpu as pltpu

EPS = 1e-07
_LANES = 128


def _sum_neg_log_kernel(x_ref, o_ref, *, c, nrows, tile_r, steps_per_chunk,
                        need_mask):
    """Accumulate -sum(log(x + c)) over valid rows into o_ref[0, :] per chunk."""
    ci = pl.program_id(0)   # parallel core-chunk axis
    si = pl.program_id(1)   # sequential reduction axis

    @pl.when(si == 0)
    def _init():
        o_ref[...] = jnp.zeros_like(o_ref)

    x = x_ref[...].astype(jnp.float32)      # in-kernel upcast (bf16 streams OK)
    logd = jnp.log(x + c)                   # one EUP log per element

    if need_mask:
        # Cheap per-ROW mask, only compiled in when needed (partial last block
        # or a redundant clamped grid step): one iota + compare + select.
        blk = ci * steps_per_chunk + si     # *unclamped* logical block index
        row = lax.broadcasted_iota(jnp.int32, (tile_r, 1), 0)
        valid = blk * tile_r + row < nrows
        logd = jnp.where(valid, logd, 0.0)

    o_ref[0:1, :] = o_ref[0:1, :] - jnp.sum(logd, axis=0, keepdims=True)


def _default_num_core_chunks():
    """2 for megacore chips (two TensorCores per chip), else 1."""
    try:
        kind = jax.devices()[0].device_kind.lower()
    except Exception:
        return 1
    if "lite" in kind or "v5e" in kind or "v6e" in kind:
        return 1                            # v5e / v6e: single TensorCore
    if any(tag in kind for tag in ("v4", "v5p", "v7", "7x")):
        return 2                            # megacore: 2 TensorCores per chip
    return 1


def nce_criterion(x, n_lem, *, block_bytes=None, num_core_chunks=None):
    """Pallas implementation of NCECriterion.forward. Returns shape (1,) f32."""
    b, d = x.shape
    k = d - 1
    kp = float(k) / float(n_lem)            # K * Pnt == K * Pns
    c = kp + EPS
    n = b * d

    if x.dtype not in (jnp.float32, jnp.bfloat16, jnp.float16):
        x = x.astype(jnp.float32)
    if num_core_chunks is None:
        num_core_chunks = _default_num_core_chunks()
    if block_bytes is None:
        # ~2 MiB f32 working set per block keeps the pipeline HBM-bound on all
        # generations; sweep 4-8 MiB on v7x if desired.
        block_bytes = 2 << 20

    # Positive-numerator term: O(B) logs over column 0, computed with plain
    # jnp (tiny strided read; negligible vs. the n-element dense stream).
    pos_sum = jnp.sum(jnp.log(x[:, 0].astype(jnp.float32)))

    # Dense view of x with ZERO copies:
    #   * lane-dense flat (n/128, 128) when that reshape is free, or
    #   * the natural (B, K+1) view tiled over batch rows otherwise.
    if n % _LANES == 0:
        xd = jnp.reshape(x, (n // _LANES, _LANES))
    else:
        xd = x
    rows, cols = xd.shape

    # Row-tile size: multiple of the dtype sublane granule, sized so one
    # block's f32 working set is ~block_bytes; clamped for small inputs.
    granule = {4: 8, 2: 16, 1: 32}[jnp.dtype(xd.dtype).itemsize]
    tile_r = max(granule, (block_bytes // (4 * cols)) // granule * granule)
    if tile_r >= rows:
        tile_r = rows                        # full-dim block is always legal
    nblocks = -(-rows // tile_r)
    num_chunks = max(1, min(int(num_core_chunks), nblocks))
    steps_per_chunk = -(-nblocks // num_chunks)
    need_mask = (rows % tile_r != 0) or (num_chunks * steps_per_chunk != nblocks)
    last_blk = nblocks - 1

    kernel = functools.partial(
        _sum_neg_log_kernel, c=c, nrows=rows, tile_r=tile_r,
        steps_per_chunk=steps_per_chunk, need_mask=need_mask)

    partials = pl.pallas_call(
        kernel,
        out_shape=jax.ShapeDtypeStruct((num_chunks * 8, cols), jnp.float32),
        grid_spec=pltpu.PrefetchScalarGridSpec(
            num_scalar_prefetch=0,
            grid=(num_chunks, steps_per_chunk),
            in_specs=[
                pl.BlockSpec(
                    (tile_r, cols),
                    # Clamp redundant trailing steps onto the last real block;
                    # the in-kernel row mask zeroes their contribution.
                    lambda ci, si: (
                        jnp.minimum(ci * steps_per_chunk + si, last_blk), 0)),
            ],
            out_specs=pl.BlockSpec((8, cols), lambda ci, si: (ci, 0)),
        ),
        compiler_params=pltpu.CompilerParams(
            dimension_semantics=("parallel", "arbitrary")),
        cost_estimate=pl.CostEstimate(
            flops=3 * n, transcendentals=n,
            bytes_accessed=n * jnp.dtype(xd.dtype).itemsize
            + 4 * num_chunks * 8 * cols),
    )(xd)

    # Finalize: sum(lnPmt)+sum(lnPon) = pos_sum + B*K*log(K*Pn) - sum log(x+c).
    const_term = float(b * k) * math.log(kp) if k > 0 else 0.0
    total = pos_sum + jnp.sum(partials) + jnp.float32(const_term)
    loss = -total / jnp.float32(b)
    return loss.reshape((1,))


def nce_criterion_ref(x, n_lem):
    """Pure-JAX reference mirroring the PyTorch code line by line."""
    batch = x.shape[0]
    k = x.shape[1] - 1
    pnt = 1.0 / float(n_lem)
    pns = 1.0 / float(n_lem)
    pmt = x[:, 0]
    pmt_div = pmt + (k * pnt + EPS)
    ln_pmt = jnp.log(pmt / pmt_div)
    pon_div = x[:, 1:] + (k * pns + EPS)
    pon = jnp.full_like(pon_div, k * pns)
    ln_pon = jnp.log(pon / pon_div)
    loss = -(jnp.sum(ln_pmt) + jnp.sum(ln_pon.reshape(-1, 1), axis=0)) / batch
    return loss  # shape (1,)


if __name__ == "__main__":
    key = jax.random.PRNGKey(0)

    cases = [
        # Canonical small NCE config: batch=8, K=15 -> x is (8, 16);
        # n % 128 == 0 so the kernel runs on the free lane-dense flat view.
        dict(batch=8, k_noise=15, n_lem=1000, dtype=jnp.float32,
             block_bytes=None, rtol=1e-5, atol=1e-5),
        # Ragged n: natural (B, K+1) zero-copy view, multi-step reduction.
        dict(batch=96, k_noise=20, n_lem=300, dtype=jnp.float32,
             block_bytes=4096, rtol=2e-5, atol=1e-4),
        # Ragged n with a partial last block -> exercises the row mask.
        dict(batch=200, k_noise=32, n_lem=500, dtype=jnp.float32,
             block_bytes=8192, rtol=5e-5, atol=5e-4),
        # Tiny batch (< 8 rows) -> full-dim block path.
        dict(batch=5, k_noise=6, n_lem=50, dtype=jnp.float32,
             block_bytes=None, rtol=1e-5, atol=1e-5),
        # bf16 dense stream (halved HBM read), flat path, multi-step grid.
        dict(batch=64, k_noise=127, n_lem=4096, dtype=jnp.bfloat16,
             block_bytes=16384, rtol=2e-4, atol=1e-3),
    ]
    for i, cfg in enumerate(cases):
        key, sub = jax.random.split(key)
        x = jax.random.uniform(sub, (cfg["batch"], cfg["k_noise"] + 1),
                               dtype=jnp.float32, minval=1e-4, maxval=1.0)
        x = x.astype(cfg["dtype"])
        loss = jax.block_until_ready(
            nce_criterion(x, cfg["n_lem"], block_bytes=cfg["block_bytes"]))
        loss_ref = jax.block_until_ready(
            nce_criterion_ref(x.astype(jnp.float32), cfg["n_lem"]))
        assert loss.shape == (1,), (i, loss.shape)
        assert jnp.allclose(loss, loss_ref, rtol=cfg["rtol"],
                            atol=cfg["atol"]), (i, loss, loss_ref)
    print("KERNEL_OK")
</pallas_src>

<mosaic_0001>
module attributes {stable_mosaic.version = 11 : i64} {
  func.func @_sum_neg_log_kernel(%arg0: i32, %arg1: i32, %arg2: memref<1x128xf32, #tpu.memory_space<vmem>>, %arg3: memref<8x128xf32, #tpu.memory_space<vmem>>) attributes {dimension_semantics = [#tpu.dimension_semantics<parallel>, #tpu.dimension_semantics<arbitrary>], iteration_bounds = array<i64: 1, 1>, scalar_prefetch = 0 : i64, scratch_operands = 0 : i64, tpu.core_type = #tpu.core_type<tc>, window_params = [{transform_indices = @transform_0, window_bounds = array<i64: 1, 128>}, {transform_indices = @transform_1, window_bounds = array<i64: 8, 128>}]} {
    %c0_i32 = arith.constant 0 : i32
    %0 = arith.cmpi eq, %arg1, %c0_i32 : i32
    %1 = arith.extui %0 : i1 to i32
    %c0_i32_0 = arith.constant 0 : i32
    %2 = arith.cmpi ne, %1, %c0_i32_0 : i32
    scf.if %2 {
      %cst_7 = arith.constant 0.000000e+00 : f32
      %12 = vector.broadcast %cst_7 : f32 to vector<8x128xf32>
      %c0_8 = arith.constant 0 : index
      %c0_9 = arith.constant 0 : index
      %13 = vector.load %arg3[%c0_8, %c0_9] : memref<8x128xf32, #tpu.memory_space<vmem>>, vector<8x128xf32>
      tpu.vector_store %arg3[%c0_8, %c0_9], %12 {strides = array<i32>} : memref<8x128xf32, #tpu.memory_space<vmem>>, vector<8x128xf32>,
    } else {
    }
    %c0 = arith.constant 0 : index
    %c0_1 = arith.constant 0 : index
    %3 = vector.load %arg2[%c0, %c0_1] : memref<1x128xf32, #tpu.memory_space<vmem>>, vector<1x128xf32>
    %cst = arith.constant 1.500010e-02 : f32
    %4 = vector.broadcast %cst : f32 to vector<1x128xf32>
    %5 = arith.addf %3, %4 : vector<1x128xf32>
    %6 = math.log %5 : vector<1x128xf32>
    %c0_2 = arith.constant 0 : index
    %c0_3 = arith.constant 0 : index
    %7 = vector.load %arg3[%c0_2, %c0_3] : memref<8x128xf32, #tpu.memory_space<vmem>>, vector<1x128xf32>
    %cst_4 = arith.constant dense<0.000000e+00> : vector<128xf32>
    %8 = vector.multi_reduction <add>, %6, %cst_4 [0] : vector<1x128xf32> to vector<128xf32>
    %9 = vector.shape_cast %8 : vector<128xf32> to vector<1x128xf32>
    %10 = arith.subf %7, %9 : vector<1x128xf32>
    %c0_5 = arith.constant 0 : index
    %c0_6 = arith.constant 0 : index
    %11 = vector.load %arg3[%c0_5, %c0_6] : memref<8x128xf32, #tpu.memory_space<vmem>>, vector<1x128xf32>
    tpu.vector_store %arg3[%c0_5, %c0_6], %10 {strides = array<i32>} : memref<8x128xf32, #tpu.memory_space<vmem>>, vector<1x128xf32>,
    return
  }
  func.func @transform_0(%arg0: i32, %arg1: i32) -> (i32, i32) {
    %c1_i32 = arith.constant 1 : i32
    %0 = arith.muli %arg0, %c1_i32 : i32
    %1 = arith.addi %0, %arg1 : i32
    %c0_i32 = arith.constant 0 : i32
    %2 = arith.minsi %1, %c0_i32 : i32
    %c0_i32_0 = arith.constant 0 : i32
    %c0_i32_1 = arith.constant 0 : i32
    return %2, %c0_i32_0 : i32, i32
  }
  func.func @transform_1(%arg0: i32, %arg1: i32) -> (i32, i32) {
    %c0_i32 = arith.constant 0 : i32
    %c0_i32_0 = arith.constant 0 : i32
    return %arg0, %c0_i32 : i32, i32
  }
}

</mosaic_0001>

<bundles_post_ra>
// kernel: tpu_custom_call.1
= control target key start
LH: loop header
LB: loop body
LE: loop exit
PB: predicated region body
PF: predicated region fallthrough
CT: control target
= control target key end

     0   :  { %6 = vsyncpa [#allocation3], 0  ;;  %s127_s0 = inlined_call_operand.hbm [shape: f32[1,128], index: 0, kind: input, shape index: {}]   ;;  %s128_s1 = inlined_call_operand.hbm [shape: f32[8,128], index: 1, kind: output, shape index: {}]  }
   0x1   :  { %7 = vsyncpa [#allocation4], 0  ;;  %s108_s6 = smov [#allocation2]  }
   0x2   :  { %s19_s7 = sshll.u32 %s108_s6, 4  ;;  %s20_s7 = int_to_ptr.vmem [resolvable:$true] %s19_s7 }
   0x3   :  { %s72_s8 = scalar_lea.vmem %s20_s7, 16  ;;  %s76_s9 = scalar_lea.vmem %s20_s7, 32 }
   0x4   :  { %p73_p0 = scmp.ne.s32.totalorder %s20_s7, %s72_s8  ;;  %p77_p1 = scmp.lt.s32.totalorder %s20_s7, %s20_s7 }
   0x5   :  { %p78_p2 = scmp.lt.s32.totalorder %s76_s9, %s72_s8 }
   0x7   :  { %p79_p3 = por %p78_p2, %p77_p1 }
   0x9   :  { %p80_p4 = pnand %p79_p3, %p73_p0 }
   0xb   :  { %83 = shalt.err (!%p80_p4)
}
   0xc   :  { %22 = dma.hbm_to_vmem [thread:$0]  %s127_s0, 16, %s20_s7, [#allocation3]  }
   0xd   :  { %104 = dma.done.wait [#allocation3], 16  }
   0xe   :  { %105 = vsyncadd [#allocation3], 4294967280  ;;  %v109_v0 = vmov 0.0   ;;  %v34_v1 = vld [vmem:[#allocation2] sm:$0x1]  ;;  %s110_s12 = smov [#allocation5]  }
   0xf   :  { %33 = vst [vmem:[#allocation5] sm:$0xff] %v109_v0  ;;  %v35_v2 = vadd.f32 0.0150001, %v34_v1  ;;  %s48_s13 = sshll.u32 %s110_s12, 4  ;;  %s49_s13 = int_to_ptr.vmem [resolvable:$true] %s48_s13 }
  0x10   :  { %s84_s14 = scalar_lea.vmem %s49_s13, 128  ;;  %p89_p6 = scmp.lt.s32.totalorder %s49_s13, %s49_s13 }
  0x11   :  { %62 = vlog2.f32 %v35_v2  ;;  %p85_p5 = scmp.ne.s32.totalorder %s49_s13, %s84_s14  ;;  %p90_p7 = scmp.lt.s32.totalorder %s84_s14, %s84_s14 }
  0x13   :  { %p91_p8 = por %p90_p7, %p89_p6 }
  0x15   :  { %p92_p9 = pnand %p91_p8, %p85_p5 }
  0x16   :  { %v38_v4 = vld [vmem:[#allocation5] sm:$0x1] }
  0x1e   :  { %v63_v3 = vpop.eup %62 }
  0x1f   :  { %v37_v5 = vmul.f32 0.6931472, %v63_v3 }
  0x21   :  { %v40_v6 = vsub.f32 %v38_v4, %v37_v5 }
  0x23   :  { %41 = vst [vmem:[#allocation5] sm:$0x1] %v40_v6 }
  0x24   :  { %95 = shalt.err (!%p92_p9)
}
  0x25   :  { %51 = dma.vmem_to_hbm [thread:$0]  %s49_s13, 128, %s128_s1, [#allocation4]  }
  0x26   :  { %106 = dma.done.wait [#allocation4], 128  }
  0x27   :  { %107 = vsyncadd [#allocation4], 4294967168 }
  0x28   :  { %55 = vsyncpa [#allocation3], 1 }
  0x29   :  { %56 = vsyncpa [#allocation4], 1 }

</bundles_post_ra>
